<compile_context>
chip_gen: v7x
topology: tpu7x:2x2x1
jax: 0.10.0
libtpu: 0.0.40
codegen_flags: <defaults>
</compile_context>

<pallas_src>
import jax
import jax.numpy as jnp
from jax.experimental import pallas as pl
from jax.experimental.pallas import tpu as pltpu


def _equal_linear_kernel(x_ref, w_ref, b_ref, o_ref, acc_ref):
    # x_ref: (tm, tk)  w_ref: (tk, tn)  b_ref: (1, tn)  o_ref: (tm, tn)
    k = pl.program_id(2)

    @pl.when(k == 0)
    def _():
        acc_ref[...] = jnp.zeros_like(acc_ref)

    acc_ref[...] += jnp.dot(x_ref[...], w_ref[...],
                            preferred_element_type=jnp.float32)

    @pl.when(k == pl.num_programs(2) - 1)
    def _():
        # bias is already pre-scaled by lr_mul in prepare_equal_linear_params
        o_ref[...] = (acc_ref[...] + b_ref[...].astype(jnp.float32)
                      ).astype(o_ref.dtype)


def _pick_tile(dim, target, step):
    """Largest multiple-of-`step` tile <= target that divides dim, else full dim."""
    t = min(target, dim)
    t = (t // step) * step
    while t >= step:
        if dim % t == 0:
            return t
        t -= step
    return dim


def prepare_equal_linear_params(weight, bias, lr_mul=1.0):
    """One-time (init-time) param prep: pre-transpose weight, pre-scale bias.

    Keeps the per-call hot path free of the HBM weight transpose and the
    bias * lr_mul broadcast-multiply.
    """
    n, _ = weight.shape
    w_t = jnp.asarray(weight).T                        # (K, N), done once
    b2d = (jnp.asarray(bias) * lr_mul).reshape(1, n)   # fold lr_mul here
    return w_t, b2d


def equal_linear_apply(x, w_t, b2d, *, tm=256, tn=256, tk=512):
    """x: (M, K), w_t: (K, N) pre-transposed, b2d: (1, N) pre-scaled bias."""
    M, K = x.shape
    K2, N = w_t.shape
    assert K2 == K and b2d.shape == (1, N)

    tm = _pick_tile(M, tm, 8)
    tn = _pick_tile(N, tn, 128)
    tk = _pick_tile(K, tk, 128)
    grid = (M // tm, N // tn, K // tk)

    return pl.pallas_call(
        _equal_linear_kernel,
        out_shape=jax.ShapeDtypeStruct((M, N), x.dtype),
        grid_spec=pltpu.PrefetchScalarGridSpec(
            num_scalar_prefetch=0,
            grid=grid,
            in_specs=[
                pl.BlockSpec((tm, tk), lambda i, j, k: (i, k)),
                pl.BlockSpec((tk, tn), lambda i, j, k: (k, j)),
                pl.BlockSpec((1, tn), lambda i, j, k: (0, j)),
            ],
            out_specs=pl.BlockSpec((tm, tn), lambda i, j, k: (i, j)),
            scratch_shapes=[pltpu.VMEM((tm, tn), jnp.float32)],
        ),
        compiler_params=pltpu.CompilerParams(
            dimension_semantics=("parallel", "parallel", "arbitrary"),
            vmem_limit_bytes=32 * 1024 * 1024,
        ),
    )(x, w_t, b2d)


def equal_linear(x, weight, bias, lr_mul=1.0):
    """Convenience wrapper matching the PyTorch module's parameter layout."""
    w_t, b2d = prepare_equal_linear_params(weight, bias, lr_mul)
    return equal_linear_apply(x, w_t, b2d)


if __name__ == "__main__":
    # Module config: EqualLinear(dim_in=32, dim_out=32, bias=True,
    #                            bias_init=0.2, lr_mul=0.5)
    dim_in, dim_out = 32, 32
    batch = 8
    bias_init = 0.2
    lr_mul = 0.5

    key = jax.random.PRNGKey(0)
    k_w, k_x = jax.random.split(key)

    # nn.Parameter(torch.randn(dim_out, dim_in)) -> standard normal
    weight = jax.random.normal(k_w, (dim_out, dim_in), dtype=jnp.float32)
    # nn.Parameter(torch.zeros(dim_out).fill_(bias_init))
    bias = jnp.full((dim_out,), bias_init, dtype=jnp.float32)

    x = jax.random.normal(k_x, (batch, dim_in), dtype=jnp.float32)

    # Param prep (transpose + bias*lr_mul) done once, off the per-call path.
    w_t, b2d = prepare_equal_linear_params(weight, bias, lr_mul)

    out = equal_linear_apply(x, w_t, b2d)
    out = jax.block_until_ready(out)

    # Pure-JAX reference of F.linear(x, weight, bias * lr_mul)
    ref = x @ weight.T + bias * lr_mul
    assert out.shape == (batch, dim_out)
    assert jnp.allclose(out, ref, atol=1e-5, rtol=1e-5), "mismatch vs reference"

    print("KERNEL_OK")
</pallas_src>

<mosaic_0001>
module attributes {stable_mosaic.version = 11 : i64} {
  func.func @_equal_linear_kernel(%arg0: i32, %arg1: i32, %arg2: i32, %arg3: memref<8x32xf32, #tpu.memory_space<vmem>>, %arg4: memref<32x32xf32, #tpu.memory_space<vmem>>, %arg5: memref<1x32xf32, #tpu.memory_space<vmem>>, %arg6: memref<8x32xf32, #tpu.memory_space<vmem>>, %arg7: memref<8x32xf32, #tpu.memory_space<vmem>>) attributes {dimension_semantics = [#tpu.dimension_semantics<parallel>, #tpu.dimension_semantics<parallel>, #tpu.dimension_semantics<arbitrary>], iteration_bounds = array<i64: 1, 1, 1>, scalar_prefetch = 0 : i64, scratch_operands = 1 : i64, tpu.core_type = #tpu.core_type<tc>, window_params = [{transform_indices = @transform_0, window_bounds = array<i64: 8, 32>}, {transform_indices = @transform_1, window_bounds = array<i64: 32, 32>}, {transform_indices = @transform_2, window_bounds = array<i64: 1, 32>}, {transform_indices = @transform_3, window_bounds = array<i64: 8, 32>}]} {
    %c0_i32 = arith.constant 0 : i32
    %0 = arith.cmpi eq, %arg2, %c0_i32 : i32
    %1 = arith.extui %0 : i1 to i32
    %c0_i32_0 = arith.constant 0 : i32
    %2 = arith.cmpi ne, %1, %c0_i32_0 : i32
    scf.if %2 {
      %cst_10 = arith.constant 0.000000e+00 : f32
      %12 = vector.broadcast %cst_10 : f32 to vector<8x32xf32>
      %c0_11 = arith.constant 0 : index
      %c0_12 = arith.constant 0 : index
      %13 = vector.load %arg7[%c0_11, %c0_12] : memref<8x32xf32, #tpu.memory_space<vmem>>, vector<8x32xf32>
      tpu.vector_store %arg7[%c0_11, %c0_12], %12 {strides = array<i32>} : memref<8x32xf32, #tpu.memory_space<vmem>>, vector<8x32xf32>,
    } else {
    }
    %c0 = arith.constant 0 : index
    %c0_1 = arith.constant 0 : index
    %3 = vector.load %arg7[%c0, %c0_1] : memref<8x32xf32, #tpu.memory_space<vmem>>, vector<8x32xf32>
    %c0_2 = arith.constant 0 : index
    %c0_3 = arith.constant 0 : index
    %4 = vector.load %arg3[%c0_2, %c0_3] : memref<8x32xf32, #tpu.memory_space<vmem>>, vector<8x32xf32>
    %c0_4 = arith.constant 0 : index
    %c0_5 = arith.constant 0 : index
    %5 = vector.load %arg4[%c0_4, %c0_5] : memref<32x32xf32, #tpu.memory_space<vmem>>, vector<32x32xf32>
    %cst = arith.constant dense<0.000000e+00> : vector<8x32xf32>
    %6 = tpu.matmul %4, %5, %cst {dimension_numbers = #tpu.dot_dimension_numbers<[1], [0], [0], [1], [0, 0, 1, 1], [], []>} : vector<8x32xf32>, vector<32x32xf32>, vector<8x32xf32> -> vector<8x32xf32>
    %7 = arith.addf %3, %6 : vector<8x32xf32>
    %c0_6 = arith.constant 0 : index
    %c0_7 = arith.constant 0 : index
    %8 = vector.load %arg7[%c0_6, %c0_7] : memref<8x32xf32, #tpu.memory_space<vmem>>, vector<8x32xf32>
    tpu.vector_store %arg7[%c0_6, %c0_7], %7 {strides = array<i32>} : memref<8x32xf32, #tpu.memory_space<vmem>>, vector<8x32xf32>,
    %c0_i32_8 = arith.constant 0 : i32
    %9 = arith.cmpi eq, %arg2, %c0_i32_8 : i32
    %10 = arith.extui %9 : i1 to i32
    %c0_i32_9 = arith.constant 0 : i32
    %11 = arith.cmpi ne, %10, %c0_i32_9 : i32
    scf.if %11 {
      %c0_10 = arith.constant 0 : index
      %c0_11 = arith.constant 0 : index
      %12 = vector.load %arg7[%c0_10, %c0_11] : memref<8x32xf32, #tpu.memory_space<vmem>>, vector<8x32xf32>
      %c0_12 = arith.constant 0 : index
      %c0_13 = arith.constant 0 : index
      %13 = vector.load %arg5[%c0_12, %c0_13] : memref<1x32xf32, #tpu.memory_space<vmem>>, vector<1x32xf32>
      %14 = vector.broadcast %13 : vector<1x32xf32> to vector<8x32xf32>
      %15 = arith.addf %12, %14 : vector<8x32xf32>
      %c0_14 = arith.constant 0 : index
      %c0_15 = arith.constant 0 : index
      %16 = vector.load %arg6[%c0_14, %c0_15] : memref<8x32xf32, #tpu.memory_space<vmem>>, vector<8x32xf32>
      tpu.vector_store %arg6[%c0_14, %c0_15], %15 {strides = array<i32>} : memref<8x32xf32, #tpu.memory_space<vmem>>, vector<8x32xf32>,
    } else {
    }
    return
  }
  func.func @transform_0(%arg0: i32, %arg1: i32, %arg2: i32) -> (i32, i32) {
    %c0_i32 = arith.constant 0 : i32
    return %arg0, %arg2 : i32, i32
  }
  func.func @transform_1(%arg0: i32, %arg1: i32, %arg2: i32) -> (i32, i32) {
    %c0_i32 = arith.constant 0 : i32
    return %arg2, %arg1 : i32, i32
  }
  func.func @transform_2(%arg0: i32, %arg1: i32, %arg2: i32) -> (i32, i32) {
    %c0_i32 = arith.constant 0 : i32
    %c0_i32_0 = arith.constant 0 : i32
    return %c0_i32, %arg1 : i32, i32
  }
  func.func @transform_3(%arg0: i32, %arg1: i32, %arg2: i32) -> (i32, i32) {
    %c0_i32 = arith.constant 0 : i32
    return %arg0, %arg1 : i32, i32
  }
}

</mosaic_0001>

<bundles_post_ra>
// kernel: tpu_custom_call.1
= control target key start
LH: loop header
LB: loop body
LE: loop exit
PB: predicated region body
PF: predicated region fallthrough
CT: control target
= control target key end

     0   :  { %8 = vsyncpa [#allocation4], 0  ;;  %s340_s0 = inlined_call_operand.hbm [shape: f32[8,32], index: 0, kind: input, shape index: {}]   ;;  %s341_s1 = inlined_call_operand.hbm [shape: f32[32,32], index: 1, kind: input, shape index: {}]   ;;  %s342_s2 = inlined_call_operand.vmem [shape: f32[1,32], index: 2, kind: input, shape index: {}]   ;;  %s343_s3 = inlined_call_operand.hbm [shape: f32[8,32], index: 3, kind: output, shape index: {}]  }
   0x1   :  { %9 = vsyncpa [#allocation7], 0 }
   0x2   :  { %10 = vsyncpa [#allocation5], 0  ;;  %s262_s12 = smov [#allocation3]   ;;  %s263_s14 = smov [#allocation6]  }
   0x3   :  { %s17_s13 = sshll.u32 %s262_s12, 4  ;;  %s26_s15 = sshll.u32 %s263_s14, 4  ;;  %s18_s13 = int_to_ptr.vmem [resolvable:$true] %s17_s13  ;;  %s290_s15 = int_to_ptr.vmem [resolvable:$true] %s26_s15 }
   0x4   :  { %s190_s18 = scalar_lea.hbm %s340_s0, 128 }
   0x5   :  { %p191_p0 = scmp.ne.s32.totalorder %s340_s0, %s190_s18  ;;  %p194_p1 = scmp.lt.u32.totalorder %s190_s18, %s340_s0 }
   0x7   :  { %p196_p2 = pnand %p194_p1, %p191_p0 }
   0x9   :  { %199 = shalt.err (!%p196_p2)
}
   0xa   :  { %s200_s23 = scalar_lea.vmem %s18_s13, 128  ;;  %p205_p4 = scmp.lt.s32.totalorder %s18_s13, %s18_s13 }
   0xb   :  { %p201_p3 = scmp.ne.s32.totalorder %s18_s13, %s200_s23  ;;  %p206_p5 = scmp.lt.s32.totalorder %s200_s23, %s200_s23 }
   0xd   :  { %p207_p6 = por %p206_p5, %p205_p4 }
   0xf   :  { %p208_p7 = pnand %p207_p6, %p201_p3 }
  0x11   :  { %211 = shalt.err (!%p208_p7)
}
  0x12   :  { %20 = dma.hbm_to_vmem [thread:$0]  %s340_s0, 128, %s18_s13, [#allocation4]  }
  0x13   :  { %s212_s28 = scalar_lea.hbm %s341_s1, 512 }
  0x14   :  { %p213_p8 = scmp.ne.s32.totalorder %s341_s1, %s212_s28  ;;  %p216_p9 = scmp.lt.u32.totalorder %s212_s28, %s341_s1 }
  0x16   :  { %p218_p10 = pnand %p216_p9, %p213_p8 }
  0x18   :  { %221 = shalt.err (!%p218_p10)
}
  0x19   :  { %s222_s6 = scalar_lea.vmem %s290_s15, 512  ;;  %p227_p12 = scmp.lt.s32.totalorder %s290_s15, %s290_s15 }
  0x1a   :  { %p223_p11 = scmp.ne.s32.totalorder %s290_s15, %s222_s6  ;;  %p228_p13 = scmp.lt.s32.totalorder %s222_s6, %s222_s6 }
  0x1c   :  { %p229_p0 = por %p228_p13, %p227_p12 }
  0x1e   :  { %p230_p1 = pnand %p229_p0, %p223_p11 }
  0x20   :  { %233 = shalt.err (!%p230_p1)
}
  0x21   :  { %s264_s0 = smov 128   ;;  %s265_s7 = smov 8  }
  0x22   :  { %32 = dma.hbm_to_vmem [thread:$0]  %s341_s1, 512, %s290_s15, [#allocation7], %s264_s0, %s264_s0, %s265_s7  }
  0x23   :  { %256 = dma.done.wait [#allocation4], 128  }
  0x24   :  { %257 = vsyncadd [#allocation4], 4294967168 }
  0x25   :  { %258 = dma.done.wait [#allocation7], 512  }
  0x26   :  { %259 = vsyncadd [#allocation7], 4294966784  ;;  %vm45_vm0 = vcmask 261120   ;;  %v266_v0 = vmov 0.0|0.0   ;;  %v267_v1 = vmov 0.0   ;;  %vm268_vm1 = vmmov 0  }
  0x27   :  { %176 = vmatprep.subr.bf16.mxu0 %v266_v0  ;;  %46 = vst.msk [vmem:[#allocation2] sm:$0xff] %vm45_vm0, %v267_v1  ;;  %173 = vmatprep.mubr.msk.f32.mxu0 %vm268_vm1, %v267_v1  ;;  %v49_v2 = vld [vmem:[#allocation6] sm:$0xff]  ;;  %v50_v3 = vld [vmem:[#allocation6 + $0x8] sm:$0xff]  ;;  %v51_v4 = vld [vmem:[#allocation6 + $0x10] sm:$0xff]  ;;  %s269_s11 = smov [#allocation8]  }
  0x28   :  { %v177_v5 = vpack.c.bf16 %v50_v3, %v49_v2  ;;  %v52_v6 = vld [vmem:[#allocation6 + $0x18] sm:$0xff]  ;;  %v159_v13 = vld [vmem:[%s342_s2] ss:$0 sm:$0xff]  ;;  %s148_s12 = sshll.u32 %s269_s11, 4  ;;  %s149_s12 = int_to_ptr.vmem [resolvable:$true] %s148_s12 }
  0x29   :  { %v180_v7 = vpack.c.bf16 %v52_v6, %v51_v4  ;;  %v48_v8 = vld [vmem:[#allocation3] sm:$0xff]  ;;  %s234_s13 = scalar_lea.vmem %s149_s12, 128  ;;  %p239_p3 = scmp.lt.s32.totalorder %s149_s12, %s149_s12 }
  0x2a   :  { %178 = vmatpush3.bf16.msra.mxu0 %v177_v5  ;;  %p235_p2 = scmp.ne.s32.totalorder %s149_s12, %s234_s13  ;;  %p240_p4 = scmp.lt.s32.totalorder %s234_s13, %s234_s13 }
  0x2b   :  { %179 = vmatprep.subr.bf16.mxu0 %v266_v0 }
  0x2c   :  { %p241_p5 = por %p240_p4, %p239_p3 }
  0x2e   :  { %181 = vmatpush3.bf16.msra.mxu0 %v180_v7  ;;  %v47_v9 = vld [vmem:[#allocation2] sm:$0xff]  ;;  %p242_p6 = pnand %p241_p5, %p235_p2 }
  0x31   :  { %174 = vmatmul.mubr.msk.f32.vlgmr.msra.gmra.mrb[0].mxu0 %vm45_vm0, %v48_v8 }
 0x104   :  { %v123_v10 = vpop.f32.mrb[0].mxu0 }
 0x105   :  { %v127_v11 = vadd.f32 %v123_v10, %v47_v9  ;;  %v175_v12 = vpop.f32.mrb[1].mxu0 }
 0x107   :  { %128 = vst.msk [vmem:[#allocation2] sm:$0xff] %vm45_vm0, %v127_v11 }
 0x10e   :  { %v132_v14 = vld [vmem:[#allocation2] sm:$0xff] }
 0x10f   :  { %v140_v15 = vadd.f32 %v159_v13, %v132_v14 }
 0x111   :  { %141 = vst.msk [vmem:[#allocation8] sm:$0xff] %vm45_vm0, %v140_v15 }
 0x112   :  { %245 = shalt.err (!%p242_p6)
}
 0x113   :  { %s246_s16 = scalar_lea.hbm %s343_s3, 128 }
 0x114   :  { %p247_p7 = scmp.ne.s32.totalorder %s343_s3, %s246_s16  ;;  %p250_p8 = scmp.lt.u32.totalorder %s246_s16, %s343_s3 }
 0x116   :  { %p252_p9 = pnand %p250_p8, %p247_p7 }
 0x118   :  { %255 = shalt.err (!%p252_p9)
}
 0x119   :  { %151 = dma.vmem_to_hbm [thread:$0]  %s149_s12, 128, %s343_s3, [#allocation5]  }
 0x11a   :  { %260 = dma.done.wait [#allocation5], 128  }
 0x11b   :  { %261 = vsyncadd [#allocation5], 4294967168 }
 0x11c   :  { %155 = vsyncpa [#allocation4], 1 }
 0x11d   :  { %156 = vsyncpa [#allocation7], 1 }
 0x11e   :  { %157 = vsyncpa [#allocation5], 1 }

</bundles_post_ra>
